<compile_context>
chip_gen: v6e
topology: v6e:2x2x1
jax: 0.10.0
libtpu: 0.0.40
codegen_flags: <defaults>
</compile_context>

<pallas_src>
import math
import functools

import jax
import jax.numpy as jnp
from jax.experimental import pallas as pl
from jax.experimental.pallas import tpu as pltpu

_VMEM = pltpu.MemorySpace.VMEM
_SMEM = pltpu.MemorySpace.SMEM

_LOG_LO = float(math.log(1e-4))
_LOG_HI = float(math.log(1.0 - 1e-4))


def _round_up(x, m):
    return ((x + m - 1) // m) * m


# --------------------------- Pallas kernels ---------------------------------

def _focal_kernel(x_ref, gt_ref, out_pos_ref, out_neg_ref, out_np_ref):
    """CenterNet focal-loss partial sums over one (TR, 128) lane-dense tile.

    Uses log-sigmoid identities:
        log p     = min(x,0) - log(1+exp(-|x|))
        log(1-p)  = log p - x
    and applies the PyTorch clamp(p, 1e-4, 1-1e-4) both on p and (monotone)
    on the log terms.  Accumulates per-lane partial sums into three resident
    (1, 128) VMEM output blocks (one per TensorCore on the parallel axis).
    Padded elements carry gt == 2.0 so they contribute nothing.
    """
    @pl.when(pl.program_id(1) == 0)
    def _():
        out_pos_ref[...] = jnp.zeros_like(out_pos_ref)
        out_neg_ref[...] = jnp.zeros_like(out_neg_ref)
        out_np_ref[...] = jnp.zeros_like(out_np_ref)

    x = x_ref[...]
    gt = gt_ref[...]

    log_p = jnp.minimum(x, 0.0) - jnp.log(1.0 + jnp.exp(-jnp.abs(x)))  # log sigmoid(x)
    log_1mp = log_p - x                                                # log(1 - sigmoid(x))
    p = jnp.clip(jnp.exp(log_p), 1e-4, 1.0 - 1e-4)
    log_p = jnp.clip(log_p, _LOG_LO, _LOG_HI)
    log_1mp = jnp.clip(log_1mp, _LOG_LO, _LOG_HI)

    pos_inds = (gt == 1.0).astype(jnp.float32)
    neg_inds = (gt < 1.0).astype(jnp.float32)
    neg_weights = (1.0 - gt) ** 4

    pos_loss = log_p * (1.0 - p) ** 2 * pos_inds
    neg_loss = log_1mp * (p * p) * neg_weights * neg_inds

    out_pos_ref[...] += jnp.sum(pos_loss, axis=0, keepdims=True)
    out_neg_ref[...] += jnp.sum(neg_loss, axis=0, keepdims=True)
    out_np_ref[...] += jnp.sum(pos_inds, axis=0, keepdims=True)


def _masked_l1_kernel(pred_ref, tgt_ref, mask_ref, out_ref, *, col_splits):
    """Fused masked-L1 reductions for the wh and reg(offset) heads.

    pred/tgt are (N, sum(col_splits)); mask is (N, 1) and is broadcast
    in-kernel.  Writes [abs_sum_head0, abs_sum_head1, ..., mask_sum] to SMEM.
    """
    pred = pred_ref[...]
    tgt = tgt_ref[...]
    m = mask_ref[...]                      # (N, 1), broadcast over columns
    diff = jnp.abs(pred * m - tgt * m)
    off = 0
    for i, c in enumerate(col_splits):
        out_ref[i] = jnp.sum(diff[:, off:off + c])
        off += c
    out_ref[len(col_splits)] = jnp.sum(m)


def _id_ce_kernel(feat_ref, w_ref, b_ref, tgt_ref, valid_ref, out_ref,
                  xn_sc, m_sc, l_sc, t_sc, *, emb_scale, tile_n):
    """ID head CE, tiled over the nID class axis with an online LSE.

    feat is resident (N, D); w/b are tiled (TN, D)/(1, TN) per grid step.
    The L2-normalize + emb_scale is computed once (first tile) into a bf16
    VMEM scratch; the matmul runs bf16 x bf16 -> f32 on the MXU.
    Final output is per-row CE (zeroed on non-valid rows), shape (N, 1).
    """
    j = pl.program_id(0)

    @pl.when(j == 0)
    def _():
        x = feat_ref[...].astype(jnp.float32)
        norm = jnp.sqrt(jnp.sum(x * x, axis=1, keepdims=True))
        norm = jnp.maximum(norm, 1e-12)                # F.normalize eps
        xn_sc[...] = ((emb_scale / norm) * x).astype(jnp.bfloat16)
        m_sc[...] = jnp.full_like(m_sc, -jnp.inf)
        l_sc[...] = jnp.zeros_like(l_sc)
        t_sc[...] = jnp.zeros_like(t_sc)

    xn = xn_sc[...]                                    # (N, D) bf16
    w_t = w_ref[...].astype(jnp.bfloat16)              # (TN, D) bf16
    s = jax.lax.dot_general(xn, w_t, (((1,), (1,)), ((), ())),
                            preferred_element_type=jnp.float32)
    s = s + b_ref[...]                                 # (N, TN) f32

    m_new = jnp.maximum(m_sc[...], jnp.max(s, axis=1, keepdims=True))
    alpha = jnp.exp(m_sc[...] - m_new)
    l_sc[...] = alpha * l_sc[...] + jnp.sum(jnp.exp(s - m_new),
                                            axis=1, keepdims=True)
    m_sc[...] = m_new

    lane = jax.lax.broadcasted_iota(jnp.int32, s.shape, 1) + j * tile_n
    t_sc[...] += jnp.sum(jnp.where(lane == tgt_ref[...], s, 0.0),
                         axis=1, keepdims=True)

    @pl.when(j == pl.num_programs(0) - 1)
    def _():
        lse = m_sc[...] + jnp.log(l_sc[...])
        out_ref[...] = (lse - t_sc[...]) * valid_ref[...]


# --------------------------- wrappers ----------------------------------------

def _tranpose_and_gather_feat(feat, ind):
    # feat: (B, C, H, W) NCHW, ind: (B, K) int32 -> (B, K, C)
    B, C, H, W = feat.shape
    feat = jnp.transpose(feat, (0, 2, 3, 1)).reshape(B, H * W, C)
    return jnp.take_along_axis(feat, ind[:, :, None].astype(jnp.int32), axis=1)


def focal_loss(pred_logits, gt, *, tile_rows=512, n_parallel=2):
    """CenterNet FocalLoss over the whole heatmap (sigmoid+clamp fused)."""
    lane = 128
    x = pred_logits.reshape(-1).astype(jnp.float32)
    g = gt.reshape(-1).astype(jnp.float32)
    total = x.shape[0]
    rows = -(-total // lane)
    tr = min(tile_rows, _round_up(rows, 8))
    npar = n_parallel if rows > n_parallel * tr else 1   # tiny inputs: 1 core
    rows_p = _round_up(rows, tr * npar)
    pad = rows_p * lane - total
    # pad gt with 2.0 -> pos_inds = neg_inds = 0, contributes nothing.
    x = jnp.pad(x, (0, pad))
    g = jnp.pad(g, (0, pad), constant_values=2.0)
    x2 = x.reshape(rows_p, lane)
    g2 = g.reshape(rows_p, lane)

    tiles_per_core = rows_p // (tr * npar)
    grid = (npar, tiles_per_core)
    in_map = lambda p, t: (p * tiles_per_core + t, 0)
    out_map = lambda p, t: (p, 0)

    outs = pl.pallas_call(
        _focal_kernel,
        out_shape=[jax.ShapeDtypeStruct((npar, lane), jnp.float32)] * 3,
        grid=grid,
        in_specs=[pl.BlockSpec((tr, lane), in_map),
                  pl.BlockSpec((tr, lane), in_map)],
        out_specs=[pl.BlockSpec((1, lane), out_map)] * 3,
        compiler_params=pltpu.CompilerParams(
            dimension_semantics=("parallel", "arbitrary")),
    )(x2, g2)

    pos_sum = jnp.sum(outs[0])
    neg_sum = jnp.sum(outs[1])
    num_pos = jnp.sum(outs[2])
    # guard the divide so it is finite on both branches (grad-safe).
    return jnp.where(num_pos == 0, -neg_sum,
                     -(pos_sum + neg_sum) / jnp.maximum(num_pos, 1.0))


def masked_l1_losses(heads, mask, ind):
    """Fused RegL1Loss for a list of (output_map NCHW, target (B,K,C)) heads.

    Returns one loss per head (all share mask/ind), computed in ONE kernel.
    """
    preds, tgts, cols = [], [], []
    for out_map, tgt in heads:
        p = _tranpose_and_gather_feat(out_map, ind)        # (B, K, C)
        B, K, C = p.shape
        preds.append(p.reshape(B * K, C))
        tgts.append(tgt.reshape(B * K, C))
        cols.append(C)
    n_heads = len(heads)
    pred = jnp.concatenate(preds, axis=1).astype(jnp.float32)   # (N, sumC)
    tgt = jnp.concatenate(tgts, axis=1).astype(jnp.float32)
    m = mask.reshape(-1, 1).astype(jnp.float32)                  # (N, 1)

    kernel = functools.partial(_masked_l1_kernel, col_splits=tuple(cols))
    sums = pl.pallas_call(
        kernel,
        out_shape=jax.ShapeDtypeStruct((n_heads + 1,), jnp.float32),
        in_specs=[pl.BlockSpec(memory_space=_VMEM)] * 3,
        out_specs=pl.BlockSpec(memory_space=_SMEM),
    )(pred, tgt, m)

    mask_sum = sums[n_heads]
    # RegL1Loss divides by the *expanded* mask sum: sum(mask) * C + 1e-4
    return [sums[i] / (mask_sum * cols[i] + 1e-4) for i in range(n_heads)]


def id_cross_entropy(id_feat_map, ind, reg_mask, ids, w, b, emb_scale, *,
                     tile_nid=512):
    feat = _tranpose_and_gather_feat(id_feat_map, ind)     # (B, K, D)
    B, K, D = feat.shape
    N = B * K
    feat2 = feat.reshape(N, D).astype(jnp.float32)
    tgt = ids.reshape(N, 1).astype(jnp.int32)
    valid = ((reg_mask.reshape(N, 1) > 0) & (tgt >= 0)).astype(jnp.float32)

    nID = w.shape[0]
    w32 = w.astype(jnp.float32)                            # (nID, D), no transpose
    b32 = b.reshape(1, nID).astype(jnp.float32)
    tn = min(tile_nid, _round_up(nID, 128))
    nid_p = _round_up(nID, tn)
    if nid_p != nID:
        # padded classes: zero weight, -1e30 bias -> no LSE contribution.
        w32 = jnp.pad(w32, ((0, nid_p - nID), (0, 0)))
        b32 = jnp.pad(b32, ((0, 0), (0, nid_p - nID)), constant_values=-1e30)

    grid = (nid_p // tn,)
    kernel = functools.partial(_id_ce_kernel, emb_scale=float(emb_scale),
                               tile_n=tn)
    ce = pl.pallas_call(
        kernel,
        out_shape=jax.ShapeDtypeStruct((N, 1), jnp.float32),
        grid=grid,
        in_specs=[
            pl.BlockSpec((N, D), lambda j: (0, 0)),        # feat (resident)
            pl.BlockSpec((tn, D), lambda j: (j, 0)),       # classifier W tile
            pl.BlockSpec((1, tn), lambda j: (0, j)),       # bias tile
            pl.BlockSpec((N, 1), lambda j: (0, 0)),        # targets (resident)
            pl.BlockSpec((N, 1), lambda j: (0, 0)),        # valid mask (resident)
        ],
        out_specs=pl.BlockSpec((N, 1), lambda j: (0, 0)),
        scratch_shapes=[
            pltpu.VMEM((N, D), jnp.bfloat16),              # normalized features
            pltpu.VMEM((N, 1), jnp.float32),               # running max
            pltpu.VMEM((N, 1), jnp.float32),               # running sum-exp
            pltpu.VMEM((N, 1), jnp.float32),               # target logit
        ],
        compiler_params=pltpu.CompilerParams(
            dimension_semantics=("arbitrary",)),
    )(feat2, w32, b32, tgt, valid)

    ce_sum = jnp.sum(ce)
    n_valid = jnp.sum(valid)
    # CE mean over non-ignored rows, guarded against 0/0.
    return jnp.where(n_valid > 0, ce_sum / jnp.maximum(n_valid, 1.0), 0.0)


# --------------------------- MotLoss forward ---------------------------------

def mot_loss_forward(outputs, batch, params, opt):
    num_stacks = opt['num_stacks']
    hm_loss = jnp.float32(0.0)
    wh_loss = jnp.float32(0.0)
    off_loss = jnp.float32(0.0)
    id_loss = jnp.float32(0.0)

    for s in range(num_stacks):
        output = outputs[s]
        # not opt.mse_loss -> sigmoid+clamp fused inside focal kernel
        hm_loss = hm_loss + focal_loss(output['hm'], batch['hm']) / num_stacks

        do_wh = opt['wh_weight'] > 0
        do_off = opt['reg_offset'] and opt['off_weight'] > 0
        heads = []
        if do_wh:
            heads.append((output['wh'], batch['wh']))
        if do_off:
            heads.append((output['reg'], batch['reg']))
        if heads:
            l1 = masked_l1_losses(heads, batch['reg_mask'], batch['ind'])
            idx = 0
            if do_wh:
                wh_loss = wh_loss + l1[idx] / num_stacks
                idx += 1
            if do_off:
                off_loss = off_loss + l1[idx] / num_stacks

        if opt['id_weight'] > 0:
            id_loss = id_loss + id_cross_entropy(
                output['id'], batch['ind'], batch['reg_mask'], batch['ids'],
                params['classifier_w'], params['classifier_b'],
                params['emb_scale'])

    det_loss = (opt['hm_weight'] * hm_loss + opt['wh_weight'] * wh_loss +
                opt['off_weight'] * off_loss)
    s_det = jnp.reshape(params['s_det'], ())
    s_id = jnp.reshape(params['s_id'], ())
    loss = (jnp.exp(-s_det) * det_loss + jnp.exp(-s_id) * id_loss +
            (s_det + s_id))
    loss = loss * 0.5
    loss_stats = {'loss': loss, 'hm_loss': hm_loss, 'wh_loss': wh_loss,
                  'off_loss': off_loss, 'id_loss': id_loss}
    return loss, loss_stats


# --------------------------- main ---------------------------------------------

if __name__ == "__main__":
    B, C_HM, H, W = 2, 1, 16, 16
    K, REID_DIM, NID = 8, 32, 64

    opt = dict(num_stacks=1, hm_weight=1.0, wh_weight=0.1, off_weight=1.0,
               id_weight=1.0, reg_offset=True)

    key = jax.random.PRNGKey(0)
    ks = jax.random.split(key, 12)

    # network outputs (raw, NCHW)
    out_hm = jax.random.normal(ks[0], (B, C_HM, H, W), jnp.float32)
    out_wh = jax.random.normal(ks[1], (B, 2, H, W), jnp.float32)
    out_reg = jax.random.normal(ks[2], (B, 2, H, W), jnp.float32)
    out_id = jax.random.normal(ks[3], (B, REID_DIM, H, W), jnp.float32)
    outputs = [{'hm': out_hm, 'wh': out_wh, 'reg': out_reg, 'id': out_id}]

    # ground-truth batch
    gt_hm = jax.random.uniform(ks[4], (B, C_HM, H, W), jnp.float32) * 0.9
    gt_hm = gt_hm.at[0, 0, 3, 5].set(1.0).at[1, 0, 7, 9].set(1.0)
    ind = jax.random.randint(ks[5], (B, K), 0, H * W, dtype=jnp.int32)
    reg_mask = jnp.array([[1, 1, 1, 1, 1, 0, 0, 0],
                          [1, 1, 1, 1, 0, 0, 0, 0]], dtype=jnp.float32)
    ids = jax.random.randint(ks[6], (B, K), 0, NID, dtype=jnp.int32)
    ids = ids.at[0, 1].set(-1)   # exercise ignore_index=-1 path
    wh_t = jax.random.uniform(ks[7], (B, K, 2), jnp.float32) * 10.0
    reg_t = jax.random.uniform(ks[8], (B, K, 2), jnp.float32)
    batch = {'hm': gt_hm, 'ind': ind, 'reg_mask': reg_mask, 'ids': ids,
             'wh': wh_t, 'reg': reg_t}

    # module parameters (deterministic synthetic init)
    params = {
        'classifier_w': 0.02 * jax.random.normal(ks[9], (NID, REID_DIM),
                                                 jnp.float32),
        'classifier_b': 0.01 * jax.random.normal(ks[10], (NID,), jnp.float32),
        's_det': jnp.full((1,), -1.85, jnp.float32),
        's_id': jnp.full((1,), -1.05, jnp.float32),
        'emb_scale': math.sqrt(2.0) * math.log(NID - 1),
    }

    loss, loss_stats = mot_loss_forward(outputs, batch, params, opt)
    loss = jax.block_until_ready(loss)
    for v in loss_stats.values():
        jax.block_until_ready(v)
    print("KERNEL_OK")
</pallas_src>

<mosaic_0001>
module attributes {stable_mosaic.version = 11 : i64} {
  func.func @_focal_kernel(%arg0: i32, %arg1: i32, %arg2: memref<8x128xf32, #tpu.memory_space<vmem>>, %arg3: memref<8x128xf32, #tpu.memory_space<vmem>>, %arg4: memref<1x128xf32, #tpu.memory_space<vmem>>, %arg5: memref<1x128xf32, #tpu.memory_space<vmem>>, %arg6: memref<1x128xf32, #tpu.memory_space<vmem>>) attributes {dimension_semantics = [#tpu.dimension_semantics<parallel>, #tpu.dimension_semantics<arbitrary>], iteration_bounds = array<i64: 1, 1>, scalar_prefetch = 0 : i64, scratch_operands = 0 : i64, tpu.core_type = #tpu.core_type<tc>, window_params = [{transform_indices = @transform_0, window_bounds = array<i64: 8, 128>}, {transform_indices = @transform_1, window_bounds = array<i64: 8, 128>}, {transform_indices = @transform_2, window_bounds = array<i64: 1, 128>}, {transform_indices = @transform_3, window_bounds = array<i64: 1, 128>}, {transform_indices = @transform_4, window_bounds = array<i64: 1, 128>}]} {
    %c0_i32 = arith.constant 0 : i32
    %0 = arith.cmpi eq, %arg1, %c0_i32 : i32
    %1 = arith.extui %0 : i1 to i32
    %c0_i32_0 = arith.constant 0 : i32
    %2 = arith.cmpi ne, %1, %c0_i32_0 : i32
    scf.if %2 {
      %cst_31 = arith.constant 0.000000e+00 : f32
      %65 = vector.broadcast %cst_31 : f32 to vector<1x128xf32>
      %c0_32 = arith.constant 0 : index
      %c0_33 = arith.constant 0 : index
      %66 = vector.load %arg4[%c0_32, %c0_33] : memref<1x128xf32, #tpu.memory_space<vmem>>, vector<1x128xf32>
      tpu.vector_store %arg4[%c0_32, %c0_33], %65 {strides = array<i32>} : memref<1x128xf32, #tpu.memory_space<vmem>>, vector<1x128xf32>,
      %cst_34 = arith.constant 0.000000e+00 : f32
      %67 = vector.broadcast %cst_34 : f32 to vector<1x128xf32>
      %c0_35 = arith.constant 0 : index
      %c0_36 = arith.constant 0 : index
      %68 = vector.load %arg5[%c0_35, %c0_36] : memref<1x128xf32, #tpu.memory_space<vmem>>, vector<1x128xf32>
      tpu.vector_store %arg5[%c0_35, %c0_36], %67 {strides = array<i32>} : memref<1x128xf32, #tpu.memory_space<vmem>>, vector<1x128xf32>,
      %cst_37 = arith.constant 0.000000e+00 : f32
      %69 = vector.broadcast %cst_37 : f32 to vector<1x128xf32>
      %c0_38 = arith.constant 0 : index
      %c0_39 = arith.constant 0 : index
      %70 = vector.load %arg6[%c0_38, %c0_39] : memref<1x128xf32, #tpu.memory_space<vmem>>, vector<1x128xf32>
      tpu.vector_store %arg6[%c0_38, %c0_39], %69 {strides = array<i32>} : memref<1x128xf32, #tpu.memory_space<vmem>>, vector<1x128xf32>,
    } else {
    }
    %c0 = arith.constant 0 : index
    %c0_1 = arith.constant 0 : index
    %3 = vector.load %arg2[%c0, %c0_1] : memref<8x128xf32, #tpu.memory_space<vmem>>, vector<8x128xf32>
    %c0_2 = arith.constant 0 : index
    %c0_3 = arith.constant 0 : index
    %4 = vector.load %arg3[%c0_2, %c0_3] : memref<8x128xf32, #tpu.memory_space<vmem>>, vector<8x128xf32>
    %cst = arith.constant 0.000000e+00 : f32
    %5 = vector.broadcast %cst : f32 to vector<8x128xf32>
    %6 = arith.minimumf %3, %5 : vector<8x128xf32>
    %7 = math.absf %3 : vector<8x128xf32>
    %cst_4 = arith.constant 0.000000e+00 : f32
    %8 = vector.broadcast %cst_4 : f32 to vector<8x128xf32>
    %9 = arith.subf %8, %7 : vector<8x128xf32>
    %10 = math.exp %9 : vector<8x128xf32>
    %cst_5 = arith.constant 1.000000e+00 : f32
    %11 = vector.broadcast %cst_5 : f32 to vector<8x128xf32>
    %12 = arith.addf %11, %10 : vector<8x128xf32>
    %13 = math.log %12 : vector<8x128xf32>
    %14 = arith.subf %6, %13 : vector<8x128xf32>
    %15 = arith.subf %14, %3 : vector<8x128xf32>
    %16 = math.exp %14 : vector<8x128xf32>
    %cst_6 = arith.constant 9.99999974E-5 : f32
    %cst_7 = arith.constant 0.999899983 : f32
    %17 = vector.broadcast %cst_6 : f32 to vector<8x128xf32>
    %18 = arith.maximumf %17, %16 : vector<8x128xf32>
    %19 = vector.broadcast %cst_7 : f32 to vector<8x128xf32>
    %20 = arith.minimumf %19, %18 : vector<8x128xf32>
    %cst_8 = arith.constant -9.21034049 : f32
    %cst_9 = arith.constant -1.000050e-04 : f32
    %21 = vector.broadcast %cst_8 : f32 to vector<8x128xf32>
    %22 = arith.maximumf %21, %14 : vector<8x128xf32>
    %23 = vector.broadcast %cst_9 : f32 to vector<8x128xf32>
    %24 = arith.minimumf %23, %22 : vector<8x128xf32>
    %cst_10 = arith.constant -9.21034049 : f32
    %cst_11 = arith.constant -1.000050e-04 : f32
    %25 = vector.broadcast %cst_10 : f32 to vector<8x128xf32>
    %26 = arith.maximumf %25, %15 : vector<8x128xf32>
    %27 = vector.broadcast %cst_11 : f32 to vector<8x128xf32>
    %28 = arith.minimumf %27, %26 : vector<8x128xf32>
    %cst_12 = arith.constant 1.000000e+00 : f32
    %29 = vector.broadcast %cst_12 : f32 to vector<8x128xf32>
    %30 = arith.cmpf oeq, %4, %29 : vector<8x128xf32>
    %31 = arith.extui %30 : vector<8x128xi1> to vector<8x128xi32>
    %32 = arith.sitofp %31 : vector<8x128xi32> to vector<8x128xf32>
    %cst_13 = arith.constant 1.000000e+00 : f32
    %33 = vector.broadcast %cst_13 : f32 to vector<8x128xf32>
    %34 = arith.cmpf olt, %4, %33 : vector<8x128xf32>
    %35 = arith.extui %34 : vector<8x128xi1> to vector<8x128xi32>
    %36 = arith.sitofp %35 : vector<8x128xi32> to vector<8x128xf32>
    %cst_14 = arith.constant 1.000000e+00 : f32
    %37 = vector.broadcast %cst_14 : f32 to vector<8x128xf32>
    %38 = arith.subf %37, %4 : vector<8x128xf32>
    %39 = arith.mulf %38, %38 : vector<8x128xf32>
    %40 = arith.mulf %39, %39 : vector<8x128xf32>
    %cst_15 = arith.constant 1.000000e+00 : f32
    %41 = vector.broadcast %cst_15 : f32 to vector<8x128xf32>
    %42 = arith.subf %41, %20 : vector<8x128xf32>
    %43 = arith.mulf %42, %42 : vector<8x128xf32>
    %44 = arith.mulf %24, %43 : vector<8x128xf32>
    %45 = arith.mulf %44, %32 : vector<8x128xf32>
    %46 = arith.mulf %20, %20 : vector<8x128xf32>
    %47 = arith.mulf %28, %46 : vector<8x128xf32>
    %48 = arith.mulf %47, %40 : vector<8x128xf32>
    %49 = arith.mulf %48, %36 : vector<8x128xf32>
    %c0_16 = arith.constant 0 : index
    %c0_17 = arith.constant 0 : index
    %50 = vector.load %arg4[%c0_16, %c0_17] : memref<1x128xf32, #tpu.memory_space<vmem>>, vector<1x128xf32>
    %cst_18 = arith.constant dense<0.000000e+00> : vector<128xf32>
    %51 = vector.multi_reduction <add>, %45, %cst_18 [0] : vector<8x128xf32> to vector<128xf32>
    %52 = vector.shape_cast %51 : vector<128xf32> to vector<1x128xf32>
    %53 = arith.addf %50, %52 : vector<1x128xf32>
    %c0_19 = arith.constant 0 : index
    %c0_20 = arith.constant 0 : index
    %54 = vector.load %arg4[%c0_19, %c0_20] : memref<1x128xf32, #tpu.memory_space<vmem>>, vector<1x128xf32>
    tpu.vector_store %arg4[%c0_19, %c0_20], %53 {strides = array<i32>} : memref<1x128xf32, #tpu.memory_space<vmem>>, vector<1x128xf32>,
    %c0_21 = arith.constant 0 : index
    %c0_22 = arith.constant 0 : index
    %55 = vector.load %arg5[%c0_21, %c0_22] : memref<1x128xf32, #tpu.memory_space<vmem>>, vector<1x128xf32>
    %cst_23 = arith.constant dense<0.000000e+00> : vector<128xf32>
    %56 = vector.multi_reduction <add>, %49, %cst_23 [0] : vector<8x128xf32> to vector<128xf32>
    %57 = vector.shape_cast %56 : vector<128xf32> to vector<1x128xf32>
    %58 = arith.addf %55, %57 : vector<1x128xf32>
    %c0_24 = arith.constant 0 : index
    %c0_25 = arith.constant 0 : index
    %59 = vector.load %arg5[%c0_24, %c0_25] : memref<1x128xf32, #tpu.memory_space<vmem>>, vector<1x128xf32>
    tpu.vector_store %arg5[%c0_24, %c0_25], %58 {strides = array<i32>} : memref<1x128xf32, #tpu.memory_space<vmem>>, vector<1x128xf32>,
    %c0_26 = arith.constant 0 : index
    %c0_27 = arith.constant 0 : index
    %60 = vector.load %arg6[%c0_26, %c0_27] : memref<1x128xf32, #tpu.memory_space<vmem>>, vector<1x128xf32>
    %cst_28 = arith.constant dense<0.000000e+00> : vector<128xf32>
    %61 = vector.multi_reduction <add>, %32, %cst_28 [0] : vector<8x128xf32> to vector<128xf32>
    %62 = vector.shape_cast %61 : vector<128xf32> to vector<1x128xf32>
    %63 = arith.addf %60, %62 : vector<1x128xf32>
    %c0_29 = arith.constant 0 : index
    %c0_30 = arith.constant 0 : index
    %64 = vector.load %arg6[%c0_29, %c0_30] : memref<1x128xf32, #tpu.memory_space<vmem>>, vector<1x128xf32>
    tpu.vector_store %arg6[%c0_29, %c0_30], %63 {strides = array<i32>} : memref<1x128xf32, #tpu.memory_space<vmem>>, vector<1x128xf32>,
    return
  }
  func.func @transform_0(%arg0: i32, %arg1: i32) -> (i32, i32) {
    %c1_i32 = arith.constant 1 : i32
    %0 = arith.muli %arg0, %c1_i32 : i32
    %1 = arith.addi %0, %arg1 : i32
    %c0_i32 = arith.constant 0 : i32
    %c0_i32_0 = arith.constant 0 : i32
    return %1, %c0_i32 : i32, i32
  }
  func.func @transform_1(%arg0: i32, %arg1: i32) -> (i32, i32) {
    %c1_i32 = arith.constant 1 : i32
    %0 = arith.muli %arg0, %c1_i32 : i32
    %1 = arith.addi %0, %arg1 : i32
    %c0_i32 = arith.constant 0 : i32
    %c0_i32_0 = arith.constant 0 : i32
    return %1, %c0_i32 : i32, i32
  }
  func.func @transform_2(%arg0: i32, %arg1: i32) -> (i32, i32) {
    %c0_i32 = arith.constant 0 : i32
    %c0_i32_0 = arith.constant 0 : i32
    return %arg0, %c0_i32 : i32, i32
  }
  func.func @transform_3(%arg0: i32, %arg1: i32) -> (i32, i32) {
    %c0_i32 = arith.constant 0 : i32
    %c0_i32_0 = arith.constant 0 : i32
    return %arg0, %c0_i32 : i32, i32
  }
  func.func @transform_4(%arg0: i32, %arg1: i32) -> (i32, i32) {
    %c0_i32 = arith.constant 0 : i32
    %c0_i32_0 = arith.constant 0 : i32
    return %arg0, %c0_i32 : i32, i32
  }
}

</mosaic_0001>

<bundles_post_ra>
// kernel: tpu_custom_call.1
= control target key start
LH: loop header
LB: loop body
LE: loop exit
PB: predicated region body
PF: predicated region fallthrough
CT: control target
= control target key end

     0   :  { %10 = vsyncpa [#allocation3], 0  ;;  %s330_s0 = inlined_call_operand.hbm [shape: f32[8,128], index: 0, kind: input, shape index: {}]   ;;  %s331_s1 = inlined_call_operand.hbm [shape: f32[8,128], index: 1, kind: input, shape index: {}]   ;;  %s332_s2 = inlined_call_operand.hbm [shape: f32[1,128], index: 2, kind: output, shape index: {0}]   ;;  %s333_s3 = inlined_call_operand.hbm [shape: f32[1,128], index: 3, kind: output, shape index: {1}]   ;;  %s334_s4 = inlined_call_operand.hbm [shape: f32[1,128], index: 4, kind: output, shape index: {2}]  }
   0x1   :  { %11 = vsyncpa [#allocation6], 0 }
   0x2   :  { %12 = vsyncpa [#allocation4], 0 }
   0x3   :  { %13 = vsyncpa [#allocation9], 0  ;;  %s284_s15 = smov [#allocation2]   ;;  %s285_s17 = smov [#allocation5]  }
   0x4   :  { %s23_s16 = sshll.u32 %s284_s15, 4  ;;  %s36_s18 = sshll.u32 %s285_s17, 4  ;;  %s24_s16 = int_to_ptr.vmem [resolvable:$true] %s23_s16  ;;  %s37_s18 = int_to_ptr.vmem [resolvable:$true] %s36_s18 }
   0x5   :  { %s184_s19 = scalar_lea.vmem %s24_s16, 128  ;;  %p189_p1 = scmp.lt.s32.totalorder %s24_s16, %s24_s16 }
   0x6   :  { %p185_p0 = scmp.ne.s32.totalorder %s24_s16, %s184_s19  ;;  %p190_p2 = scmp.lt.s32.totalorder %s184_s19, %s184_s19 }
   0x8   :  { %p191_p3 = por %p190_p2, %p189_p1 }
   0xa   :  { %p192_p4 = pnand %p191_p3, %p185_p0 }
   0xc   :  { %195 = shalt.err (!%p192_p4)
}
   0xd   :  { %26 = dma.hbm_to_vmem [thread:$0]  %s330_s0, 128, %s24_s16, [#allocation3]  }
   0xe   :  { %s204_s22 = scalar_lea.vmem %s37_s18, 128  ;;  %p209_p6 = scmp.lt.s32.totalorder %s37_s18, %s37_s18 }
   0xf   :  { %p205_p5 = scmp.ne.s32.totalorder %s37_s18, %s204_s22  ;;  %p210_p7 = scmp.lt.s32.totalorder %s204_s22, %s204_s22 }
  0x11   :  { %p211_p8 = por %p210_p7, %p209_p6 }
  0x13   :  { %p212_p9 = pnand %p211_p8, %p205_p5 }
  0x15   :  { %215 = shalt.err (!%p212_p9)
}
  0x16   :  { %39 = dma.hbm_to_vmem [thread:$0]  %s331_s1, 128, %s37_s18, [#allocation6]  }
  0x17   :  { %276 = dma.done.wait [#allocation3], 128  }
  0x18   :  { %277 = vsyncadd [#allocation3], 4294967168 }
  0x19   :  { %278 = dma.done.wait [#allocation6], 128  }
  0x1a   :  { %279 = vsyncadd [#allocation6], 4294967168  ;;  %v286_v0 = vmov 0.0   ;;  %v56_v1 = vld [vmem:[#allocation5] sm:$0xff]  ;;  %v55_v2 = vld [vmem:[#allocation2] sm:$0xff]  ;;  %s287_s0 = smov [#allocation8]  }
  0x1b   :  { %53 = vst [vmem:[#allocation8] sm:$0x1] %v286_v0  ;;  %52 = vst [vmem:[#allocation7] sm:$0x1] %v286_v0  ;;  %vm75_vm0 = vcmp.eq.f32.partialorder %v56_v1, 1.0  ;;  %vm78_vm1 = vcmp.lt.f32.partialorder %v56_v1, 1.0 }
  0x1c   :  { %54 = vst [vmem:[#allocation10] sm:$0x1] %v286_v0  ;;  %v58_v3 = vand.u32 2147483647, %v55_v2  ;;  %v162_v4 = vsel %vm75_vm0, 1.0, %v286_v0  ;;  %v163_v5 = vsel %vm78_vm1, 1.0, %v286_v0 }
  0x1d   :  { %v111_v7 = vrot.slane %v162_v4, 4  ;;  %v57_v18 = vmin.f32 %v55_v2, 0.0  ;;  %v81_v24 = vsub.f32 1.0, %v56_v1  ;;  %s135_s1 = sshll.u32 %s287_s0, 4  ;;  %s288_s25 = smov [#allocation7]   ;;  %s136_s1 = int_to_ptr.vmem [resolvable:$true] %s135_s1 }
  0x1e   :  { %v59_v6 = vsub.f32 0.0, %v58_v3  ;;  %s125_s26 = sshll.u32 %s288_s25, 4  ;;  %s289_s27 = smov [#allocation10]   ;;  %s126_s26 = int_to_ptr.vmem [resolvable:$true] %s125_s26 }
  0x1f   :  { %v112_v9 = vadd.f32 %v162_v4, %v111_v7  ;;  %v82_v28 = vmul.f32 %v81_v24, %v81_v24  ;;  %s145_s28 = sshll.u32 %s289_s27, 4  ;;  %s216_s29 = scalar_lea.vmem %s136_s1, 16  ;;  %s146_s28 = int_to_ptr.vmem [resolvable:$true] %s145_s28 }
  0x20   :  { %v60_v8 = vmul.f32 1.442695, %v59_v6  ;;  %p217_p10 = scmp.ne.s32.totalorder %s136_s1, %s216_s29  ;;  %s220_s30 = scalar_lea.vmem %s136_s1, 32 }
  0x21   :  { %v113_v10 = vrot.slane %v112_v9, 2  ;;  %v83_v32 = vmul.f32 %v82_v28, %v82_v28  ;;  %p221_p11 = scmp.lt.s32.totalorder %s136_s1, %s136_s1  ;;  %p222_p12 = scmp.lt.s32.totalorder %s220_s30, %s216_s29 }
  0x22   :  { %170 = vpow2.f32 %v60_v8  ;;  %v101_v52 = vld [vmem:[#allocation8] sm:$0x1]  ;;  %v92_v53 = vld [vmem:[#allocation7] sm:$0x1] }
  0x23   :  { %v114_v11 = vadd.f32 %v113_v10, %v112_v9  ;;  %v110_v13 = vld [vmem:[#allocation10] sm:$0x1]  ;;  %p223_p13 = por %p222_p12, %p221_p11 }
  0x25   :  { %v115_v12 = vrot.slane %v114_v11, 1  ;;  %p224_p0 = pnand %p223_p13, %p217_p10 }
  0x27   :  { %v116_v14 = vadd.f32 %v115_v12, %v114_v11 }
  0x29   :  { %v117_v15 = vadd.f32 %v116_v14, %v110_v13 }
  0x2b   :  { %118 = vst [vmem:[#allocation10] sm:$0x1] %v117_v15 }
  0x2f   :  { %v171_v16 = vpop.eup %170 }
  0x30   :  { %v62_v17 = vadd.f32 1.0, %v171_v16 }
  0x32   :  { %172 = vlog2.f32 %v62_v17 }
  0x3f   :  { %v173_v19 = vpop.eup %172 }
  0x40   :  { %v64_v20 = vmul.f32 0.6931472, %v173_v19 }
  0x42   :  { %v65_v21 = vsub.f32 %v57_v18, %v64_v20 }
  0x44   :  { %v67_v22 = vmul.f32 1.442695, %v65_v21  ;;  %v66_v23 = vsub.f32 %v65_v21, %v55_v2  ;;  %v71_v29 = vmax.f32 %v65_v21, -9.2103405 }
  0x46   :  { %174 = vpow2.f32 %v67_v22  ;;  %v73_v25 = vmax.f32 %v66_v23, -9.2103405  ;;  %v72_v34 = vmin.f32 %v71_v29, -0.000100005 }
  0x48   :  { %v74_v31 = vmin.f32 %v73_v25, -0.000100005 }
  0x53   :  { %v175_v26 = vpop.eup %174 }
  0x54   :  { %v69_v27 = vmax.f32 %v175_v26, 0.0001 }
  0x56   :  { %v70_v30 = vmin.f32 %v69_v27, 0.9999 }
  0x58   :  { %v88_v33 = vmul.f32 %v70_v30, %v70_v30  ;;  %v84_v35 = vsub.f32 1.0, %v70_v30 }
  0x5a   :  { %v89_v36 = vmul.f32 %v88_v33, %v74_v31  ;;  %v85_v37 = vmul.f32 %v84_v35, %v84_v35 }
  0x5c   :  { %v90_v38 = vmul.f32 %v89_v36, %v83_v32  ;;  %v86_v39 = vmul.f32 %v85_v37, %v72_v34 }
  0x5e   :  { %v91_v40 = vmul.f32 %v163_v5, %v90_v38  ;;  %v87_v41 = vmul.f32 %v162_v4, %v86_v39 }
  0x60   :  { %v102_v42 = vrot.slane %v91_v40, 4  ;;  %v93_v43 = vrot.slane %v87_v41, 4 }
  0x62   :  { %v103_v44 = vadd.f32 %v102_v42, %v91_v40  ;;  %v94_v45 = vadd.f32 %v93_v43, %v87_v41 }
  0x64   :  { %v104_v46 = vrot.slane %v103_v44, 2  ;;  %v95_v47 = vrot.slane %v94_v45, 2 }
  0x66   :  { %v105_v48 = vadd.f32 %v104_v46, %v103_v44  ;;  %v96_v49 = vadd.f32 %v95_v47, %v94_v45 }
  0x68   :  { %v106_v50 = vrot.slane %v105_v48, 1  ;;  %v97_v51 = vrot.slane %v96_v49, 1 }
  0x6a   :  { %v107_v54 = vadd.f32 %v106_v50, %v105_v48  ;;  %v98_v55 = vadd.f32 %v97_v51, %v96_v49 }
  0x6c   :  { %v108_v56 = vadd.f32 %v107_v54, %v101_v52  ;;  %v99_v57 = vadd.f32 %v98_v55, %v92_v53 }
  0x6e   :  { %109 = vst [vmem:[#allocation8] sm:$0x1] %v108_v56  ;;  %100 = vst [vmem:[#allocation7] sm:$0x1] %v99_v57 }
  0x6f   :  { %227 = shalt.err (!%p224_p0)
}
  0x70   :  { %138 = dma.vmem_to_hbm [thread:$0]  %s136_s1, 16, %s333_s3, [#allocation9]  }
  0x71   :  { %s236_s7 = scalar_lea.vmem %s126_s26, 16  ;;  %s240_s8 = scalar_lea.vmem %s126_s26, 32 }
  0x72   :  { %p237_p1 = scmp.ne.s32.totalorder %s126_s26, %s236_s7  ;;  %p241_p2 = scmp.lt.s32.totalorder %s126_s26, %s126_s26 }
  0x73   :  { %p242_p3 = scmp.lt.s32.totalorder %s240_s8, %s236_s7 }
  0x75   :  { %p243_p4 = por %p242_p3, %p241_p2 }
  0x77   :  { %p244_p5 = pnand %p243_p4, %p237_p1 }
  0x79   :  { %247 = shalt.err (!%p244_p5)
}
  0x7a   :  { %128 = dma.vmem_to_hbm [thread:$0]  %s126_s26, 16, %s332_s2, [#allocation4]  }
  0x7b   :  { %s256_s11 = scalar_lea.vmem %s146_s28, 16  ;;  %s260_s12 = scalar_lea.vmem %s146_s28, 32 }
  0x7c   :  { %p257_p6 = scmp.ne.s32.totalorder %s146_s28, %s256_s11  ;;  %p261_p7 = scmp.lt.s32.totalorder %s146_s28, %s146_s28 }
  0x7d   :  { %p262_p8 = scmp.lt.s32.totalorder %s260_s12, %s256_s11 }
  0x7f   :  { %p263_p9 = por %p262_p8, %p261_p7 }
  0x81   :  { %p264_p10 = pnand %p263_p9, %p257_p6 }
  0x83   :  { %267 = shalt.err (!%p264_p10)
}
  0x84   :  { %148 = dma.vmem_to_hbm [thread:$0]  %s146_s28, 16, %s334_s4, [#allocation9]  }
  0x85   :  { %280 = dma.done.wait [#allocation4], 16  }
  0x86   :  { %281 = vsyncadd [#allocation4], 4294967280 }
  0x87   :  { %282 = dma.done.wait [#allocation9], 32  }
  0x88   :  { %283 = vsyncadd [#allocation9], 4294967264 }
  0x89   :  { %158 = vsyncpa [#allocation3], 1 }
  0x8a   :  { %159 = vsyncpa [#allocation6], 1 }
  0x8b   :  { %160 = vsyncpa [#allocation4], 1 }
  0x8c   :  { %161 = vsyncpa [#allocation9], 1 }

</bundles_post_ra>
